<compile_context>
chip_gen: v7x
topology: tpu7x:2x2x1
jax: 0.10.0
libtpu: 0.0.40
codegen_flags: <defaults>
</compile_context>

<pallas_src>
import functools

import jax
import jax.numpy as jnp
from jax import lax
from jax.experimental import pallas as pl
from jax.experimental.pallas import tpu as pltpu


# -----------------------------------------------------------------------------
# Kernel A: momentum update + both encoders + normalize + l_pos   (tiny, cold)
# -----------------------------------------------------------------------------
def _moco_encode_kernel(xq_ref, xk_ref, wq_ref, bq_ref, wk_ref, bk_ref,
                        q_ref, k_ref, lpos_ref, wk_new_ref, bk_new_ref,
                        *, momentum, inv_temperature):
    m = jnp.float32(momentum)
    inv_t = jnp.float32(inv_temperature)

    # ---- _momentum_update_key_encoder (before encoding k) ----
    wk_new = m * wk_ref[...] + (1.0 - m) * wq_ref[...]
    bk_new = m * bk_ref[...] + (1.0 - m) * bq_ref[...]
    wk_new_ref[...] = wk_new
    bk_new_ref[...] = bk_new

    # ---- q = normalize(encoder_q(input_q), dim=1) ----
    q = jnp.dot(xq_ref[...], wq_ref[...],
                preferred_element_type=jnp.float32) + bq_ref[...]
    q = q / jnp.maximum(jnp.sqrt(jnp.sum(q * q, axis=1, keepdims=True)), 1e-12)

    # ---- k = normalize(encoder_k(input_k), dim=1)   (updated params) ----
    k = jnp.dot(xk_ref[...], wk_new,
                preferred_element_type=jnp.float32) + bk_new
    k = k / jnp.maximum(jnp.sqrt(jnp.sum(k * k, axis=1, keepdims=True)), 1e-12)
    k_ref[...] = k

    # Pre-scale q by 1/T: the hot l_neg kernel becomes a bare matmul and
    # l_pos below already comes out divided by the temperature.
    q_scaled = q * inv_t
    q_ref[...] = q_scaled

    # ---- l_pos = einsum('nc,nc->n', q, k) / T ----
    lpos = jnp.sum(q_scaled * k, axis=1, keepdims=True)            # (N, 1)
    # Lane-dense (N, 128) output block (avoid masked 1-lane stores); the
    # wrapper slices column 0.
    lpos_ref[...] = jnp.broadcast_to(lpos, lpos_ref.shape)


# -----------------------------------------------------------------------------
# Kernel B: l_neg = (q / T) @ queue_tile^T, streamed over the queue   (hot path)
# -----------------------------------------------------------------------------
def _moco_lneg_kernel(q_ref, queue_ref, lneg_ref):
    # q (N, C) is already scaled by 1/T; queue tile is (block_k, C).
    # Contract the feature (lane) axis of both -> lane-dense (N, block_k) tile.
    lneg_ref[...] = lax.dot_general(
        q_ref[...], queue_ref[...],
        dimension_numbers=(((1,), (1,)), ((), ())),
        preferred_element_type=jnp.float32)


# -----------------------------------------------------------------------------
# Kernel C: in-place dequeue/enqueue — write ONLY the N new rows of the queue.
# -----------------------------------------------------------------------------
def _moco_enqueue_kernel(ptr_ref, k_ref, queue_in_ref, lneg_dep_ref,
                         queue_out_ref, dma_sem, *, batch):
    # queue_in_ref is only here as the aliasing operand; lneg_dep_ref only
    # orders this in-place write after the l_neg read of the old queue.
    del queue_in_ref, lneg_dep_ref
    ptr = ptr_ref[0]
    if batch % 8 == 0:
        ptr = pl.multiple_of(ptr, 8)   # aligned sublane rows (ptr % batch == 0)
    # TODO(synk): no wrap-around handling; like PyTorch MoCo this relies on
    #             queue_size % batch == 0 so ptr + batch <= queue_size.
    cp = pltpu.make_async_copy(
        k_ref, queue_out_ref.at[pl.ds(ptr, batch), :], dma_sem)
    cp.start()
    cp.wait()


def _pick_block_k(queue_size, cap=2048):
    """Largest multiple-of-128 divisor of queue_size that is <= cap.

    cap=2048 keeps the double-buffered queue/l_neg tiles a few MiB — safe on
    v7x's 64 MiB VMEM (32 MiB default scoped); v6e/v5e could go larger.
    """
    best = 128
    b = 128
    while b <= min(queue_size, cap):
        if queue_size % b == 0:
            best = b
        b += 128
    return best


@functools.partial(jax.jit, static_argnames=("momentum", "temperature", "block_k"))
def moco_forward(input_q, input_k, wq, bq, wk, bk, queue_t, queue_ptr,
                 *, momentum, temperature, block_k=None):
    """MoCo forward.

    queue_t is the MoCo queue stored transposed: (queue_size, feature_dim).
    Returns ((logits, labels), (wk_new, bk_new, queue_t_new, queue_ptr_new)).

    Note: in a real training loop, donate queue_t at the jit boundary so the
    aliased in-place enqueue needs no XLA safety copy of the queue.
    """
    n, d_in = input_q.shape
    c = wq.shape[1]
    ksz = queue_t.shape[0]
    if ksz % 128 != 0:
        raise ValueError("queue_size must be a multiple of 128")
    if block_k is None:
        block_k = _pick_block_k(ksz)
    assert ksz % block_k == 0
    nk = ksz // block_k
    lpos_lanes = 128

    # ---- kernel A: encoders / momentum update / l_pos ------------------------
    q_scaled, k_keys, lpos_lane, wk_new, bk_new = pl.pallas_call(
        functools.partial(_moco_encode_kernel, momentum=momentum,
                          inv_temperature=1.0 / temperature),
        out_shape=(
            jax.ShapeDtypeStruct((n, c), jnp.float32),            # q * (1/T)
            jax.ShapeDtypeStruct((n, c), jnp.float32),            # k
            jax.ShapeDtypeStruct((n, lpos_lanes), jnp.float32),   # l_pos / T (lane-bcast)
            jax.ShapeDtypeStruct((d_in, c), jnp.float32),         # wk_new
            jax.ShapeDtypeStruct((1, c), jnp.float32),            # bk_new
        ),
        grid=(1,),
        in_specs=[
            pl.BlockSpec((n, d_in), lambda i: (0, 0)),
            pl.BlockSpec((n, d_in), lambda i: (0, 0)),
            pl.BlockSpec((d_in, c), lambda i: (0, 0)),
            pl.BlockSpec((1, c), lambda i: (0, 0)),
            pl.BlockSpec((d_in, c), lambda i: (0, 0)),
            pl.BlockSpec((1, c), lambda i: (0, 0)),
        ],
        out_specs=(
            pl.BlockSpec((n, c), lambda i: (0, 0)),
            pl.BlockSpec((n, c), lambda i: (0, 0)),
            pl.BlockSpec((n, lpos_lanes), lambda i: (0, 0)),
            pl.BlockSpec((d_in, c), lambda i: (0, 0)),
            pl.BlockSpec((1, c), lambda i: (0, 0)),
        ),
        compiler_params=pltpu.CompilerParams(
            dimension_semantics=("arbitrary",)),
    )(input_q, input_k, wq, bq, wk, bk)

    # ---- kernel B: l_neg, queue streamed in (block_k, C) tiles ----------------
    lneg = pl.pallas_call(
        _moco_lneg_kernel,
        out_shape=jax.ShapeDtypeStruct((n, ksz), jnp.float32),
        grid=(nk,),
        in_specs=[
            pl.BlockSpec((n, c), lambda i: (0, 0)),          # q: resident, fetched once
            pl.BlockSpec((block_k, c), lambda i: (i, 0)),    # queue: streamed tiles
        ],
        out_specs=pl.BlockSpec((n, block_k), lambda i: (0, i)),
        compiler_params=pltpu.CompilerParams(
            dimension_semantics=("parallel",)),              # v7x: split K over cores
    )(q_scaled, queue_t)

    # ---- kernel C: in-place enqueue (queue aliased; only N rows written) ------
    queue_t_new = pl.pallas_call(
        functools.partial(_moco_enqueue_kernel, batch=n),
        out_shape=jax.ShapeDtypeStruct((ksz, c), jnp.float32),
        grid=(1,),
        in_specs=[
            pl.BlockSpec(memory_space=pltpu.MemorySpace.SMEM),   # queue_ptr
            pl.BlockSpec((n, c), lambda i: (0, 0)),              # k (VMEM DMA source)
            pl.BlockSpec(memory_space=pl.ANY),                   # queue (aliased, HBM)
            pl.BlockSpec(memory_space=pl.ANY),                   # l_neg: ordering dep only
        ],
        out_specs=pl.BlockSpec(memory_space=pl.ANY),
        scratch_shapes=[pltpu.SemaphoreType.DMA],
        input_output_aliases={2: 0},                             # queue_t -> queue_t_new
        compiler_params=pltpu.CompilerParams(
            dimension_semantics=("arbitrary",)),
    )(queue_ptr, k_keys, queue_t, lneg)

    # Final (N, 1+K) logits: the +1 column offset breaks 128-lane block
    # alignment, so the concat stays in XLA (it fuses into the consumer loss
    # in a real training step).  Both kernel outputs are lane-dense.
    logits = jnp.concatenate([lpos_lane[:, :1], lneg], axis=1)
    labels = jnp.zeros((n,), dtype=jnp.int32)   # torch.long -> int32 (x32 JAX)
    queue_ptr_new = (queue_ptr + n) % ksz
    # TODO(synk): real MoCo shuffles/all-gathers keys across devices before
    #             enqueue; this single-device kernel omits that.
    return (logits, labels), (wk_new, bk_new, queue_t_new, queue_ptr_new)


def _reference(input_q, input_k, wq, bq, wk, bk, queue_t, ptr, momentum, temperature):
    """Pure-jnp replica of the PyTorch forward for verification."""
    def norm(x):
        return x / jnp.maximum(jnp.linalg.norm(x, axis=1, keepdims=True), 1e-12)
    wk_new = momentum * wk + (1 - momentum) * wq
    bk_new = momentum * bk + (1 - momentum) * bq
    q = norm(input_q @ wq + bq)
    k = norm(input_k @ wk_new + bk_new)
    l_pos = jnp.sum(q * k, axis=1, keepdims=True)
    l_neg = q @ queue_t.T
    logits = jnp.concatenate([l_pos, l_neg], axis=1) / temperature
    queue_new = lax.dynamic_update_slice(queue_t, k, (ptr[0], jnp.int32(0)))
    return logits, wk_new, bk_new, queue_new


if __name__ == "__main__":
    # config (small, consistent with the module)
    batch = 8
    in_dim = 128
    feature_dim = 128
    queue_size = 512
    momentum = 0.999
    temperature = 0.07
    block_k = 128          # 4-step streamed grid in the l_neg kernel

    key = jax.random.PRNGKey(0)
    k_xq, k_xk, k_w, k_b, k_q = jax.random.split(key, 5)

    input_q = jax.random.normal(k_xq, (batch, in_dim), dtype=jnp.float32)
    input_k = jax.random.normal(k_xk, (batch, in_dim), dtype=jnp.float32)

    # encoder_q params; encoder_k initialized as a copy (as in MoCo.__init__)
    wq = jax.random.normal(k_w, (in_dim, feature_dim), dtype=jnp.float32) * 0.02
    bq = jax.random.normal(k_b, (1, feature_dim), dtype=jnp.float32) * 0.01
    wk = wq
    bk = bq

    # queue buffer: randn(feature_dim, queue_size) normalized along dim=0,
    # stored transposed as (queue_size, feature_dim)
    queue_t = jax.random.normal(k_q, (queue_size, feature_dim), dtype=jnp.float32)
    queue_t = queue_t / jnp.maximum(
        jnp.linalg.norm(queue_t, axis=1, keepdims=True), 1e-12)
    queue_ptr = jnp.zeros((1,), dtype=jnp.int32)

    (logits, labels), (wk_new, bk_new, queue_t_new, ptr_new) = moco_forward(
        input_q, input_k, wq, bq, wk, bk, queue_t, queue_ptr,
        momentum=momentum, temperature=temperature, block_k=block_k)
    jax.block_until_ready((logits, labels, wk_new, bk_new, queue_t_new, ptr_new))

    # numerical check against a pure-jnp reference
    ref_logits, ref_wk, ref_bk, ref_queue = _reference(
        input_q, input_k, wq, bq, wk, bk, queue_t, queue_ptr,
        momentum, temperature)
    assert logits.shape == (batch, 1 + queue_size)
    assert labels.shape == (batch,) and labels.dtype == jnp.int32
    assert jnp.allclose(logits, ref_logits, atol=1e-3, rtol=1e-3)
    assert jnp.allclose(wk_new, ref_wk, atol=1e-5, rtol=1e-5)
    assert jnp.allclose(bk_new, ref_bk, atol=1e-5, rtol=1e-5)
    assert jnp.allclose(queue_t_new, ref_queue, atol=1e-5, rtol=1e-5)
    assert int(ptr_new[0]) == batch % queue_size

    print("KERNEL_OK")
</pallas_src>

<mosaic_0001>
module attributes {stable_mosaic.version = 11 : i64} {
  func.func @_moco_lneg_kernel(%arg0: i32, %arg1: memref<8x128xf32, #tpu.memory_space<vmem>>, %arg2: memref<128x128xf32, #tpu.memory_space<vmem>>, %arg3: memref<8x128xf32, #tpu.memory_space<vmem>>) attributes {dimension_semantics = [#tpu.dimension_semantics<parallel>], iteration_bounds = array<i64: 4>, scalar_prefetch = 0 : i64, scratch_operands = 0 : i64, tpu.core_type = #tpu.core_type<tc>, window_params = [{pipeline_mode = #tpu.pipeline_mode<synchronous>, transform_indices = @transform_0, window_bounds = array<i64: 8, 128>}, {transform_indices = @transform_1, window_bounds = array<i64: 128, 128>}, {transform_indices = @transform_2, window_bounds = array<i64: 8, 128>}]} {
    %c0 = arith.constant 0 : index
    %c0_0 = arith.constant 0 : index
    %0 = vector.load %arg1[%c0, %c0_0] : memref<8x128xf32, #tpu.memory_space<vmem>>, vector<8x128xf32>
    %c0_1 = arith.constant 0 : index
    %c0_2 = arith.constant 0 : index
    %1 = vector.load %arg2[%c0_1, %c0_2] : memref<128x128xf32, #tpu.memory_space<vmem>>, vector<128x128xf32>
    %cst = arith.constant dense<0.000000e+00> : vector<8x128xf32>
    %2 = tpu.matmul %0, %1, %cst {dimension_numbers = #tpu.dot_dimension_numbers<[1], [1], [0], [0], [0, 0, 1, 0], [], []>} : vector<8x128xf32>, vector<128x128xf32>, vector<8x128xf32> -> vector<8x128xf32>
    %c0_3 = arith.constant 0 : index
    %c0_4 = arith.constant 0 : index
    %3 = vector.load %arg3[%c0_3, %c0_4] : memref<8x128xf32, #tpu.memory_space<vmem>>, vector<8x128xf32>
    tpu.vector_store %arg3[%c0_3, %c0_4], %2 {strides = array<i32>} : memref<8x128xf32, #tpu.memory_space<vmem>>, vector<8x128xf32>,
    return
  }
  func.func @transform_0(%arg0: i32) -> (i32, i32) {
    %c0_i32 = arith.constant 0 : i32
    %c0_i32_0 = arith.constant 0 : i32
    %c0_i32_1 = arith.constant 0 : i32
    return %c0_i32, %c0_i32_0 : i32, i32
  }
  func.func @transform_1(%arg0: i32) -> (i32, i32) {
    %c0_i32 = arith.constant 0 : i32
    %c0_i32_0 = arith.constant 0 : i32
    return %arg0, %c0_i32 : i32, i32
  }
  func.func @transform_2(%arg0: i32) -> (i32, i32) {
    %c0_i32 = arith.constant 0 : i32
    %c0_i32_0 = arith.constant 0 : i32
    return %c0_i32, %arg0 : i32, i32
  }
}

module attributes {stable_mosaic.version = 11 : i64} {
  func.func @_moco_enqueue_kernel(%arg0: i32, %arg1: memref<1xi32, #tpu.memory_space<smem>>, %arg2: memref<8x128xf32, #tpu.memory_space<vmem>>, %arg3: memref<512x128xf32, #tpu.memory_space<any>>, %arg4: memref<8x512xf32, #tpu.memory_space<any>>, %arg5: memref<512x128xf32, #tpu.memory_space<any>>, %arg6: memref<!tpu.dma_semaphore, #tpu.memory_space<semaphore_mem>>) attributes {dimension_semantics = [#tpu.dimension_semantics<arbitrary>], iteration_bounds = array<i64: 1>, scalar_prefetch = 0 : i64, scratch_operands = 1 : i64, tpu.core_type = #tpu.core_type<tc>, window_params = [{transform_indices = @transform_0, window_bounds = array<i64: 1>}, {pipeline_mode = #tpu.pipeline_mode<synchronous>, transform_indices = @transform_1, window_bounds = array<i64: 8, 128>}, {}, {}, {}]} {
    %c0 = arith.constant 0 : index
    %0 = memref.load %arg1[%c0] : memref<1xi32, #tpu.memory_space<smem>>
    %1 = tpu.assume_multiple %0, 8 : i32
    %c0_i32 = arith.constant 0 : i32
    %2 = tpu.memref_slice %arg5[%1, %c0_i32] : memref<512x128xf32, #tpu.memory_space<any>> -> memref<8x128xf32, #tpu.memory_space<any>>
    tpu.enqueue_dma source(%arg2 : memref<8x128xf32, #tpu.memory_space<vmem>>) target(%2 : memref<8x128xf32, #tpu.memory_space<any>>) target_semaphore(%arg6 : memref<!tpu.dma_semaphore, #tpu.memory_space<semaphore_mem>>)
    %c0_i32_0 = arith.constant 0 : i32
    %3 = tpu.memref_slice %arg5[%1, %c0_i32_0] : memref<512x128xf32, #tpu.memory_space<any>> -> memref<8x128xf32, #tpu.memory_space<any>>
    tpu.wait_dma2 semaphore(%arg6 : memref<!tpu.dma_semaphore, #tpu.memory_space<semaphore_mem>>) src(%arg2 : memref<8x128xf32, #tpu.memory_space<vmem>>) dst(%3 : memref<8x128xf32, #tpu.memory_space<any>>)
    return
  }
  func.func @transform_0(%arg0: i32) -> i32 {
    %c0_i32 = arith.constant 0 : i32
    %c0_i32_0 = arith.constant 0 : i32
    return %c0_i32 : i32
  }
  func.func @transform_1(%arg0: i32) -> (i32, i32) {
    %c0_i32 = arith.constant 0 : i32
    %c0_i32_0 = arith.constant 0 : i32
    %c0_i32_1 = arith.constant 0 : i32
    return %c0_i32, %c0_i32_0 : i32, i32
  }
}

module attributes {stable_mosaic.version = 11 : i64} {
  func.func @_moco_encode_kernel(%arg0: i32, %arg1: memref<8x128xf32, #tpu.memory_space<vmem>>, %arg2: memref<8x128xf32, #tpu.memory_space<vmem>>, %arg3: memref<128x128xf32, #tpu.memory_space<vmem>>, %arg4: memref<1x128xf32, #tpu.memory_space<vmem>>, %arg5: memref<128x128xf32, #tpu.memory_space<vmem>>, %arg6: memref<1x128xf32, #tpu.memory_space<vmem>>, %arg7: memref<8x128xf32, #tpu.memory_space<vmem>>, %arg8: memref<8x128xf32, #tpu.memory_space<vmem>>, %arg9: memref<8x128xf32, #tpu.memory_space<vmem>>, %arg10: memref<128x128xf32, #tpu.memory_space<vmem>>, %arg11: memref<1x128xf32, #tpu.memory_space<vmem>>) attributes {dimension_semantics = [#tpu.dimension_semantics<arbitrary>], iteration_bounds = array<i64: 1>, scalar_prefetch = 0 : i64, scratch_operands = 0 : i64, tpu.core_type = #tpu.core_type<tc>, window_params = [{pipeline_mode = #tpu.pipeline_mode<synchronous>, transform_indices = @transform_0, window_bounds = array<i64: 8, 128>}, {pipeline_mode = #tpu.pipeline_mode<synchronous>, transform_indices = @transform_1, window_bounds = array<i64: 8, 128>}, {pipeline_mode = #tpu.pipeline_mode<synchronous>, transform_indices = @transform_2, window_bounds = array<i64: 128, 128>}, {pipeline_mode = #tpu.pipeline_mode<synchronous>, transform_indices = @transform_3, window_bounds = array<i64: 1, 128>}, {pipeline_mode = #tpu.pipeline_mode<synchronous>, transform_indices = @transform_4, window_bounds = array<i64: 128, 128>}, {pipeline_mode = #tpu.pipeline_mode<synchronous>, transform_indices = @transform_5, window_bounds = array<i64: 1, 128>}, {pipeline_mode = #tpu.pipeline_mode<synchronous>, transform_indices = @transform_6, window_bounds = array<i64: 8, 128>}, {pipeline_mode = #tpu.pipeline_mode<synchronous>, transform_indices = @transform_7, window_bounds = array<i64: 8, 128>}, {pipeline_mode = #tpu.pipeline_mode<synchronous>, transform_indices = @transform_8, window_bounds = array<i64: 8, 128>}, {pipeline_mode = #tpu.pipeline_mode<synchronous>, transform_indices = @transform_9, window_bounds = array<i64: 128, 128>}, {pipeline_mode = #tpu.pipeline_mode<synchronous>, transform_indices = @transform_10, window_bounds = array<i64: 1, 128>}]} {
    %c0 = arith.constant 0 : index
    %c0_0 = arith.constant 0 : index
    %0 = vector.load %arg5[%c0, %c0_0] : memref<128x128xf32, #tpu.memory_space<vmem>>, vector<128x128xf32>
    %cst = arith.constant 9.990000e-01 : f32
    %1 = vector.broadcast %cst : f32 to vector<128x128xf32>
    %2 = arith.mulf %1, %0 : vector<128x128xf32>
    %cst_1 = arith.constant 1.000000e+00 : f32
    %cst_2 = arith.constant 9.990000e-01 : f32
    %3 = arith.subf %cst_1, %cst_2 : f32
    %c0_3 = arith.constant 0 : index
    %c0_4 = arith.constant 0 : index
    %4 = vector.load %arg3[%c0_3, %c0_4] : memref<128x128xf32, #tpu.memory_space<vmem>>, vector<128x128xf32>
    %5 = vector.broadcast %3 : f32 to vector<128x128xf32>
    %6 = arith.mulf %5, %4 : vector<128x128xf32>
    %7 = arith.addf %2, %6 : vector<128x128xf32>
    %c0_5 = arith.constant 0 : index
    %c0_6 = arith.constant 0 : index
    %8 = vector.load %arg6[%c0_5, %c0_6] : memref<1x128xf32, #tpu.memory_space<vmem>>, vector<1x128xf32>
    %cst_7 = arith.constant 9.990000e-01 : f32
    %9 = vector.broadcast %cst_7 : f32 to vector<1x128xf32>
    %10 = arith.mulf %9, %8 : vector<1x128xf32>
    %cst_8 = arith.constant 1.000000e+00 : f32
    %cst_9 = arith.constant 9.990000e-01 : f32
    %11 = arith.subf %cst_8, %cst_9 : f32
    %c0_10 = arith.constant 0 : index
    %c0_11 = arith.constant 0 : index
    %12 = vector.load %arg4[%c0_10, %c0_11] : memref<1x128xf32, #tpu.memory_space<vmem>>, vector<1x128xf32>
    %13 = vector.broadcast %11 : f32 to vector<1x128xf32>
    %14 = arith.mulf %13, %12 : vector<1x128xf32>
    %15 = arith.addf %10, %14 : vector<1x128xf32>
    %c0_12 = arith.constant 0 : index
    %c0_13 = arith.constant 0 : index
    %16 = vector.load %arg10[%c0_12, %c0_13] : memref<128x128xf32, #tpu.memory_space<vmem>>, vector<128x128xf32>
    tpu.vector_store %arg10[%c0_12, %c0_13], %7 {strides = array<i32>} : memref<128x128xf32, #tpu.memory_space<vmem>>, vector<128x128xf32>,
    %c0_14 = arith.constant 0 : index
    %c0_15 = arith.constant 0 : index
    %17 = vector.load %arg11[%c0_14, %c0_15] : memref<1x128xf32, #tpu.memory_space<vmem>>, vector<1x128xf32>
    tpu.vector_store %arg11[%c0_14, %c0_15], %15 {strides = array<i32>} : memref<1x128xf32, #tpu.memory_space<vmem>>, vector<1x128xf32>,
    %c0_16 = arith.constant 0 : index
    %c0_17 = arith.constant 0 : index
    %18 = vector.load %arg1[%c0_16, %c0_17] : memref<8x128xf32, #tpu.memory_space<vmem>>, vector<8x128xf32>
    %c0_18 = arith.constant 0 : index
    %c0_19 = arith.constant 0 : index
    %19 = vector.load %arg3[%c0_18, %c0_19] : memref<128x128xf32, #tpu.memory_space<vmem>>, vector<128x128xf32>
    %cst_20 = arith.constant dense<0.000000e+00> : vector<8x128xf32>
    %20 = tpu.matmul %18, %19, %cst_20 {dimension_numbers = #tpu.dot_dimension_numbers<[1], [0], [0], [1], [0, 0, 1, 1], [], []>} : vector<8x128xf32>, vector<128x128xf32>, vector<8x128xf32> -> vector<8x128xf32>
    %c0_21 = arith.constant 0 : index
    %c0_22 = arith.constant 0 : index
    %21 = vector.load %arg4[%c0_21, %c0_22] : memref<1x128xf32, #tpu.memory_space<vmem>>, vector<1x128xf32>
    %22 = vector.broadcast %21 : vector<1x128xf32> to vector<8x128xf32>
    %23 = arith.addf %20, %22 : vector<8x128xf32>
    %24 = arith.mulf %23, %23 : vector<8x128xf32>
    %cst_23 = arith.constant dense<0.000000e+00> : vector<8xf32>
    %25 = vector.multi_reduction <add>, %24, %cst_23 [1] : vector<8x128xf32> to vector<8xf32>
    %26 = vector.shape_cast %25 : vector<8xf32> to vector<8x1xf32>
    %27 = math.sqrt %26 : vector<8x1xf32>
    %cst_24 = arith.constant 9.99999996E-13 : f32
    %28 = vector.broadcast %cst_24 : f32 to vector<8x1xf32>
    %29 = arith.maximumf %27, %28 : vector<8x1xf32>
    %30 = vector.broadcast %29 : vector<8x1xf32> to vector<8x128xf32>
    %31 = arith.divf %23, %30 : vector<8x128xf32>
    %c0_25 = arith.constant 0 : index
    %c0_26 = arith.constant 0 : index
    %32 = vector.load %arg2[%c0_25, %c0_26] : memref<8x128xf32, #tpu.memory_space<vmem>>, vector<8x128xf32>
    %cst_27 = arith.constant dense<0.000000e+00> : vector<8x128xf32>
    %33 = tpu.matmul %32, %7, %cst_27 {dimension_numbers = #tpu.dot_dimension_numbers<[1], [0], [0], [1], [0, 0, 1, 1], [], []>} : vector<8x128xf32>, vector<128x128xf32>, vector<8x128xf32> -> vector<8x128xf32>
    %34 = vector.broadcast %15 : vector<1x128xf32> to vector<8x128xf32>
    %35 = arith.addf %33, %34 : vector<8x128xf32>
    %36 = arith.mulf %35, %35 : vector<8x128xf32>
    %cst_28 = arith.constant dense<0.000000e+00> : vector<8xf32>
    %37 = vector.multi_reduction <add>, %36, %cst_28 [1] : vector<8x128xf32> to vector<8xf32>
    %38 = vector.shape_cast %37 : vector<8xf32> to vector<8x1xf32>
    %39 = math.sqrt %38 : vector<8x1xf32>
    %cst_29 = arith.constant 9.99999996E-13 : f32
    %40 = vector.broadcast %cst_29 : f32 to vector<8x1xf32>
    %41 = arith.maximumf %39, %40 : vector<8x1xf32>
    %42 = vector.broadcast %41 : vector<8x1xf32> to vector<8x128xf32>
    %43 = arith.divf %35, %42 : vector<8x128xf32>
    %c0_30 = arith.constant 0 : index
    %c0_31 = arith.constant 0 : index
    %44 = vector.load %arg8[%c0_30, %c0_31] : memref<8x128xf32, #tpu.memory_space<vmem>>, vector<8x128xf32>
    tpu.vector_store %arg8[%c0_30, %c0_31], %43 {strides = array<i32>} : memref<8x128xf32, #tpu.memory_space<vmem>>, vector<8x128xf32>,
    %cst_32 = arith.constant 14.2857141 : f32
    %45 = vector.broadcast %cst_32 : f32 to vector<8x128xf32>
    %46 = arith.mulf %31, %45 : vector<8x128xf32>
    %c0_33 = arith.constant 0 : index
    %c0_34 = arith.constant 0 : index
    %47 = vector.load %arg7[%c0_33, %c0_34] : memref<8x128xf32, #tpu.memory_space<vmem>>, vector<8x128xf32>
    tpu.vector_store %arg7[%c0_33, %c0_34], %46 {strides = array<i32>} : memref<8x128xf32, #tpu.memory_space<vmem>>, vector<8x128xf32>,
    %48 = arith.mulf %46, %43 : vector<8x128xf32>
    %cst_35 = arith.constant dense<0.000000e+00> : vector<8xf32>
    %49 = vector.multi_reduction <add>, %48, %cst_35 [1] : vector<8x128xf32> to vector<8xf32>
    %50 = vector.shape_cast %49 : vector<8xf32> to vector<8x1xf32>
    %51 = vector.shape_cast %50 : vector<8x1xf32> to vector<8x1xf32>
    %52 = vector.broadcast %51 : vector<8x1xf32> to vector<8x128xf32>
    %c0_36 = arith.constant 0 : index
    %c0_37 = arith.constant 0 : index
    %53 = vector.load %arg9[%c0_36, %c0_37] : memref<8x128xf32, #tpu.memory_space<vmem>>, vector<8x128xf32>
    tpu.vector_store %arg9[%c0_36, %c0_37], %52 {strides = array<i32>} : memref<8x128xf32, #tpu.memory_space<vmem>>, vector<8x128xf32>,
    return
  }
  func.func @transform_0(%arg0: i32) -> (i32, i32) {
    %c0_i32 = arith.constant 0 : i32
    %c0_i32_0 = arith.constant 0 : i32
    %c0_i32_1 = arith.constant 0 : i32
    return %c0_i32, %c0_i32_0 : i32, i32
  }
  func.func @transform_1(%arg0: i32) -> (i32, i32) {
    %c0_i32 = arith.constant 0 : i32
    %c0_i32_0 = arith.constant 0 : i32
    %c0_i32_1 = arith.constant 0 : i32
    return %c0_i32, %c0_i32_0 : i32, i32
  }
  func.func @transform_2(%arg0: i32) -> (i32, i32) {
    %c0_i32 = arith.constant 0 : i32
    %c0_i32_0 = arith.constant 0 : i32
    %c0_i32_1 = arith.constant 0 : i32
    return %c0_i32, %c0_i32_0 : i32, i32
  }
  func.func @transform_3(%arg0: i32) -> (i32, i32) {
    %c0_i32 = arith.constant 0 : i32
    %c0_i32_0 = arith.constant 0 : i32
    %c0_i32_1 = arith.constant 0 : i32
    return %c0_i32, %c0_i32_0 : i32, i32
  }
  func.func @transform_4(%arg0: i32) -> (i32, i32) {
    %c0_i32 = arith.constant 0 : i32
    %c0_i32_0 = arith.constant 0 : i32
    %c0_i32_1 = arith.constant 0 : i32
    return %c0_i32, %c0_i32_0 : i32, i32
  }
  func.func @transform_5(%arg0: i32) -> (i32, i32) {
    %c0_i32 = arith.constant 0 : i32
    %c0_i32_0 = arith.constant 0 : i32
    %c0_i32_1 = arith.constant 0 : i32
    return %c0_i32, %c0_i32_0 : i32, i32
  }
  func.func @transform_6(%arg0: i32) -> (i32, i32) {
    %c0_i32 = arith.constant 0 : i32
    %c0_i32_0 = arith.constant 0 : i32
    %c0_i32_1 = arith.constant 0 : i32
    return %c0_i32, %c0_i32_0 : i32, i32
  }
  func.func @transform_7(%arg0: i32) -> (i32, i32) {
    %c0_i32 = arith.constant 0 : i32
    %c0_i32_0 = arith.constant 0 : i32
    %c0_i32_1 = arith.constant 0 : i32
    return %c0_i32, %c0_i32_0 : i32, i32
  }
  func.func @transform_8(%arg0: i32) -> (i32, i32) {
    %c0_i32 = arith.constant 0 : i32
    %c0_i32_0 = arith.constant 0 : i32
    %c0_i32_1 = arith.constant 0 : i32
    return %c0_i32, %c0_i32_0 : i32, i32
  }
  func.func @transform_9(%arg0: i32) -> (i32, i32) {
    %c0_i32 = arith.constant 0 : i32
    %c0_i32_0 = arith.constant 0 : i32
    %c0_i32_1 = arith.constant 0 : i32
    return %c0_i32, %c0_i32_0 : i32, i32
  }
  func.func @transform_10(%arg0: i32) -> (i32, i32) {
    %c0_i32 = arith.constant 0 : i32
    %c0_i32_0 = arith.constant 0 : i32
    %c0_i32_1 = arith.constant 0 : i32
    return %c0_i32, %c0_i32_0 : i32, i32
  }
}

</mosaic_0001>

<bundles_post_ra>
// kernel: moco_forward.5
= control target key start
LH: loop header
LB: loop body
LE: loop exit
PB: predicated region body
PF: predicated region fallthrough
CT: control target
= control target key end

     0   :  { %s113_s0 = inlined_call_operand.<no memory space> [shape: s32[1], index: 0, kind: input, shape index: {}]   ;;  %s114_s1 = inlined_call_operand.vmem [shape: f32[8,128], index: 1, kind: input, shape index: {}]   ;;  %s115_s2 = inlined_call_operand.vmem [shape: f32[512,128], index: 2, kind: input, shape index: {}, may-alias: {2,4}]   ;;  %s116_s3 = inlined_call_operand.vmem [shape: f32[8,512], index: 3, kind: input, shape index: {}]   ;;  %s117_s4 = inlined_call_operand.vmem [shape: f32[512,128], index: 4, kind: output, shape index: {}, may-alias: {2,4}]  }
   0x1   :  { %s15_s19 = scalar_lea.vmem %s117_s4, %s113_s0  ;;  %v48_v0 = vld [vmem:[%s114_s1] sm:$0xff] }
   0x2   :  { %49 = vst [vmem:[%s15_s19] sm:$0xff] %v48_v0 }
   0x3   :  { %57 = vsyncadd [#allocation2], 128 }
   0x4   :  { %77 = dma.done.wait [#allocation2], 128 }
   0x5   :  { %78 = vsyncadd [#allocation2], 4294967168 }
   0x6   :  { %61 = vsyncmov [#allocation2] }
   0x9   :  { %s62_s2 = vpop.sfrf %61 }
   0xa   :  { %p76_p0 = scmp.ne.s32.totalorder %s62_s2, 0 }
   0xc   :  { %66 = shalt.err (%p76_p0)  }

// kernel: moco_forward.4
= control target key start
LH: loop header
LB: loop body
LE: loop exit
PB: predicated region body
PF: predicated region fallthrough
CT: control target
= control target key end

     0   :  { %s408_s9 = smov 0   ;;  %s451_s0 = inlined_call_operand.vmem [shape: f32[8,128], index: 0, kind: input, shape index: {}]   ;;  %s452_s1 = inlined_call_operand.vmem [shape: f32[512,128], index: 1, kind: input, shape index: {}]   ;;  %s453_s2 = inlined_call_operand.vmem [shape: f32[8,512], index: 2, kind: output, shape index: {}]  }
   0x1 LB: > { %s414_s10 = sadd.s32 4294967295, %s388_s9   ;;  %p289_p0 = scmp.ge.s32.totalorder %s388_s9, 1  ;;  %s388_s9 = sphi %s408_s9, %s12_s9  }
   0x2   : > { %p113_p1 = scmp.lt.s32.totalorder %s388_s9, 5 }
   0x4   : > { %p114_p2 = pnand %p289_p0, %p113_p1 }
   0x5   : > { %s290_s11 = sshll.u32 (!%p114_p2), %s414_s10, 4  ;;  %v390_v0 = vmov (!%p114_p2), 0.0|0.0   ;;  %vm391_vm0 = vmmov (!%p114_p2), 0   ;;  %v392_v1 = vmov (!%p114_p2), 0.0   ;;  %v144_v26 = vld [vmem:[%s451_s0] sm:$0xff] (!%p114_p2)  ;;  %p140_p4 = scmp.lt.s32.totalorder (!%p114_p2), %s414_s10, 3 }
   0x6   : > { %117 = sbr.rel (%p114_p2) target bundleno = 295 (0x127), region = 28  ;;  %347 = vmatprep.subr.bf16.mxu0 (!%p114_p2), %v390_v0  ;;  %p135_p3 = scmp.lt.s32.totalorder (!%p114_p2), %s290_s11, 63  ;;  %344 = vmatprep.mubr.msk.f32.mxu0 (!%p114_p2), %vm391_vm0, %v392_v1 }
   0xd   : > { %s455_s11 = smov (!%p135_p3, %s290_s11), 63  ;;  %s457_s10 = smov (!%p140_p4, %s414_s10), 3 }
   0xe   : > { %s291_s12 = sshll.u32 %s455_s11, 3  ;;  %s292_s18 = sshll.u32 %s457_s10, 3 }
   0xf   : > { %s422_s15 = scalar_lea.vmem %s452_s1, %s291_s12  ;;  %s143_s21 = scalar_lea.vmem %s453_s2, %s292_s18 }
  0x10   : > { %v145_v2 = vld [vmem:[%s422_s15] sm:$0xff]  ;;  %v146_v3 = vld [vmem:[%s422_s15 + $0x8] sm:$0xff]  ;;  %v147_v5 = vld [vmem:[%s422_s15 + $0x10] sm:$0xff] }
  0x11   : > { %v348_v4 = vpack.c.bf16 %v146_v3, %v145_v2  ;;  %v148_v6 = vld [vmem:[%s422_s15 + $0x18] sm:$0xff]  ;;  %v149_v8 = vld [vmem:[%s422_s15 + $0x20] sm:$0xff]  ;;  %v150_v9 = vld [vmem:[%s422_s15 + $0x28] sm:$0xff] }
  0x12   : > { %v351_v7 = vpack.c.bf16 %v148_v6, %v147_v5  ;;  %v354_v10 = vpack.c.bf16 %v150_v9, %v149_v8  ;;  %v151_v11 = vld [vmem:[%s422_s15 + $0x30] sm:$0xff]  ;;  %v152_v12 = vld [vmem:[%s422_s15 + $0x38] sm:$0xff]  ;;  %v153_v14 = vld [vmem:[%s422_s15 + $0x40] sm:$0xff] }
  0x13   : > { %349 = vmatpush3.bf16.xpose.msra.mxu0 %v348_v4  ;;  %v357_v13 = vpack.c.bf16 %v152_v12, %v151_v11  ;;  %v154_v15 = vld [vmem:[%s422_s15 + $0x48] sm:$0xff]  ;;  %v155_v17 = vld [vmem:[%s422_s15 + $0x50] sm:$0xff]  ;;  %v156_v18 = vld [vmem:[%s422_s15 + $0x58] sm:$0xff] }
  0x14   : > { %350 = vmatprep.subr.bf16.mxu0 %v390_v0  ;;  %v360_v16 = vpack.c.bf16 %v154_v15, %v153_v14  ;;  %v363_v19 = vpack.c.bf16 %v156_v18, %v155_v17  ;;  %v157_v20 = vld [vmem:[%s422_s15 + $0x60] sm:$0xff]  ;;  %v158_v21 = vld [vmem:[%s422_s15 + $0x68] sm:$0xff]  ;;  %v159_v23 = vld [vmem:[%s422_s15 + $0x70] sm:$0xff] }
  0x15   : > { %v366_v22 = vpack.c.bf16 %v158_v21, %v157_v20  ;;  %v160_v24 = vld [vmem:[%s422_s15 + $0x78] sm:$0xff] }
  0x16   : > { %v369_v25 = vpack.c.bf16 %v160_v24, %v159_v23 }
  0x1b   : > { %352 = vmatpush3.bf16.xpose.msra.mxu0 %v351_v7 }
  0x1c   : > { %353 = vmatprep.subr.bf16.mxu0 %v390_v0 }
  0x23   : > { %355 = vmatpush3.bf16.xpose.msra.mxu0 %v354_v10 }
  0x24   : > { %356 = vmatprep.subr.bf16.mxu0 %v390_v0 }
  0x2b   : > { %358 = vmatpush3.bf16.xpose.msra.mxu0 %v357_v13 }
  0x2c   : > { %359 = vmatprep.subr.bf16.mxu0 %v390_v0 }
  0x33   : > { %361 = vmatpush3.bf16.xpose.msra.mxu0 %v360_v16 }
  0x34   : > { %362 = vmatprep.subr.bf16.mxu0 %v390_v0 }
  0x3b   : > { %364 = vmatpush3.bf16.xpose.msra.mxu0 %v363_v19 }
  0x3c   : > { %365 = vmatprep.subr.bf16.mxu0 %v390_v0 }
  0x43   : > { %367 = vmatpush3.bf16.xpose.msra.mxu0 %v366_v22 }
  0x44   : > { %368 = vmatprep.subr.bf16.mxu0 %v390_v0 }
  0x4b   : > { %370 = vmatpush3.bf16.xpose.msra.mxu0 %v369_v25 }
  0x52   : > { %345 = vmatmul.mubr.f32.vlgmr.msra.gmra.mrb[0].mxu0 %v144_v26 }
 0x125   : > { %v227_v27 = vpop.f32.mrb[0].mxu0 }
 0x126   : > { %231 = vst [vmem:[%s143_s21] sm:$0xff] %v227_v27  ;;  %v346_v28 = vpop.f32.mrb[1].mxu0 }
 0x127 PF: > { %s12_s9 = sadd.s32 1, %s388_s9  }
 0x128   : > { %p9_p5 = scmp.ge.s32.totalorder %s12_s9, 6  }
 0x12a   :  { %11 = sbr.rel (!%p9_p5) target bundleno = 1 (0x1), region = 58 }

// kernel: moco_forward.3
= control target key start
LH: loop header
LB: loop body
LE: loop exit
PB: predicated region body
PF: predicated region fallthrough
CT: control target
= control target key end

     0   :  { %16 = vsyncpa [#allocation3], 0  ;;  %v594_v3 = vmov 0.0|0.0   ;;  %vm595_vm0 = vmmov 0   ;;  %v596_v12 = vmov 0.0   ;;  %s856_s0 = inlined_call_operand.vmem [shape: f32[8,128], index: 0, kind: input, shape index: {}]   ;;  %s857_s1 = inlined_call_operand.vmem [shape: f32[8,128], index: 1, kind: input, shape index: {}]   ;;  %s858_s2 = inlined_call_operand.vmem [shape: f32[128,128], index: 2, kind: input, shape index: {}]   ;;  %s859_s3 = inlined_call_operand.vmem [shape: f32[1,128], index: 3, kind: input, shape index: {}]   ;;  %s860_s4 = inlined_call_operand.vmem [shape: f32[128,128], index: 4, kind: input, shape index: {}]   ;;  %s861_s5 = inlined_call_operand.vmem [shape: f32[1,128], index: 5, kind: input, shape index: {}]   ;;  %s862_s6 = inlined_call_operand.vmem [shape: f32[8,128], index: 6, kind: output, shape index: {0}]   ;;  %s863_s7 = inlined_call_operand.vmem [shape: f32[8,128], index: 7, kind: output, shape index: {1}]   ;;  %s864_s8 = inlined_call_operand.vmem [shape: f32[8,128], index: 8, kind: output, shape index: {2}]   ;;  %s865_s9 = inlined_call_operand.hbm [shape: f32[128,128], index: 9, kind: output, shape index: {3}]   ;;  %s866_s10 = inlined_call_operand.hbm [shape: f32[1,128], index: 10, kind: output, shape index: {4}]  }
   0x1   :  { %v133_v0 = vld [vmem:[%s858_s2] sm:$0xff]  ;;  %v134_v1 = vld [vmem:[%s858_s2 + $0x8] sm:$0xff]  ;;  %v135_v2 = vld [vmem:[%s858_s2 + $0x10] sm:$0xff]  ;;  %483 = vmatprep.subr.bf16.mxu0 %v594_v3  ;;  %507 = vmatprep.subr.bf16.mxu1 %v594_v3 }
   0x2   :  { %v484_v4 = vpack.c.bf16 %v134_v1, %v133_v0  ;;  %v136_v5 = vld [vmem:[%s858_s2 + $0x18] sm:$0xff]  ;;  %v30_v6 = vld [vmem:[%s860_s4] sm:$0xff]  ;;  %v31_v7 = vld [vmem:[%s860_s4 + $0x8] sm:$0xff]  ;;  %v78_v8 = vmul.f32 0.0009999871, %v133_v0  ;;  %445 = vmatprep.mubr.msk.f32.mxu0 %vm595_vm0, %v596_v12  ;;  %480 = vmatprep.mubr.msk.f32.mxu1 %vm595_vm0, %v596_v12 }
   0x3   :  { %v46_v9 = vmul.f32 0.999, %v30_v6  ;;  %v47_v10 = vmul.f32 0.999, %v31_v7  ;;  %v79_v11 = vmul.f32 0.0009999871, %v134_v1  ;;  %v487_v13 = vpack.c.bf16 %v136_v5, %v135_v2 }
   0x4   :  { %485 = vmatpush3.bf16.msra.mxu0 %v484_v4  ;;  %v137_v14 = vld [vmem:[%s858_s2 + $0x20] sm:$0xff]  ;;  %v138_v15 = vld [vmem:[%s858_s2 + $0x28] sm:$0xff]  ;;  %v32_v16 = vld [vmem:[%s860_s4 + $0x10] sm:$0xff]  ;;  %v80_v17 = vmul.f32 0.0009999871, %v135_v2 }
   0x5   :  { %486 = vmatprep.subr.bf16.mxu0 %v594_v3  ;;  %v94_v18 = vadd.f32 %v78_v8, %v46_v9  ;;  %v95_v19 = vadd.f32 %v79_v11, %v47_v10  ;;  %v33_v20 = vld [vmem:[%s860_s4 + $0x18] sm:$0xff]  ;;  %v48_v21 = vmul.f32 0.999, %v32_v16  ;;  %v692_v22 = vld [vmem:[%s858_s2 + $0x30] sm:$0xff]  ;;  %v81_v25 = vmul.f32 0.0009999871, %v136_v5 }
   0x6   :  { %v697_v23 = vld [vmem:[%s858_s2 + $0x38] sm:$0xff]  ;;  %v49_v24 = vmul.f32 0.999, %v33_v20  ;;  %v34_v26 = vld [vmem:[%s860_s4 + $0x20] sm:$0xff]  ;;  %v35_v27 = vld [vmem:[%s860_s4 + $0x28] sm:$0xff]  ;;  %v490_v34 = vpack.c.bf16 %v138_v15, %v137_v14 }
   0x7   :  { %115 = vst [vmem:[#allocation2] sm:$0xff] %v94_v18  ;;  %116 = vst [vmem:[#allocation2 + $0x8] sm:$0xff] %v95_v19  ;;  %v508_v28 = vpack.c.bf16 %v95_v19, %v94_v18  ;;  %v96_v29 = vadd.f32 %v80_v17, %v48_v21  ;;  %v50_v30 = vmul.f32 0.999, %v34_v26  ;;  %v51_v31 = vmul.f32 0.999, %v35_v27 }
   0x8   :  { %v708_v32 = vld [vmem:[%s858_s2 + $0x40] sm:$0xff]  ;;  %v713_v33 = vld [vmem:[%s858_s2 + $0x48] sm:$0xff]  ;;  %488 = vmatpush3.bf16.msra.mxu0 %v487_v13  ;;  %v97_v35 = vadd.f32 %v81_v25, %v49_v24  ;;  %v82_v36 = vmul.f32 0.0009999871, %v137_v14  ;;  %v83_v37 = vmul.f32 0.0009999871, %v138_v15  ;;  %v493_v54 = vpack.c.bf16 %v697_v23, %v692_v22 }
   0x9   :  { %v36_v38 = vld [vmem:[%s860_s4 + $0x30] sm:$0xff]  ;;  %v37_v39 = vld [vmem:[%s860_s4 + $0x38] sm:$0xff]  ;;  %509 = vmatpush3.bf16.msra.mxu1 %v508_v28  ;;  %489 = vmatprep.subr.bf16.mxu0 %v594_v3  ;;  %117 = vst [vmem:[#allocation2 + $0x10] sm:$0xff] %v96_v29  ;;  %v84_v42 = vmul.f32 0.0009999871, %v692_v22  ;;  %v38_v48 = vld [vmem:[%s860_s4 + $0x40] sm:$0xff]  ;;  %v496_v8 = vpack.c.bf16 %v713_v33, %v708_v32 }
   0xa   :  { %v52_v40 = vmul.f32 0.999, %v36_v38  ;;  %v53_v41 = vmul.f32 0.999, %v37_v39  ;;  %510 = vmatprep.subr.bf16.mxu1 %v594_v3  ;;  %118 = vst [vmem:[#allocation2 + $0x18] sm:$0xff] %v97_v35  ;;  %v511_v43 = vpack.c.bf16 %v97_v35, %v96_v29  ;;  %v98_v44 = vadd.f32 %v82_v36, %v50_v30  ;;  %v728_v47 = vld [vmem:[%s858_s2 + $0x50] sm:$0xff] }
   0xb   :  { %v99_v45 = vadd.f32 %v83_v37, %v51_v31  ;;  %v85_v46 = vmul.f32 0.0009999871, %v697_v23  ;;  %v738_v50 = vld [vmem:[%s858_s2 + $0x58] sm:$0xff]  ;;  %v39_v51 = vld [vmem:[%s860_s4 + $0x48] sm:$0xff]  ;;  %v54_v52 = vmul.f32 0.999, %v38_v48 }
   0xc   :  { %v733_v49 = vadd.f32 %v84_v42, %v52_v40  ;;  %v86_v53 = vmul.f32 0.0009999871, %v708_v32  ;;  %491 = vmatpush3.bf16.msra.mxu0 %v490_v34  ;;  %119 = vst [vmem:[#allocation2 + $0x20] sm:$0xff] %v98_v44  ;;  %v55_v56 = vmul.f32 0.999, %v39_v51  ;;  %v750_v58 = vld [vmem:[%s858_s2 + $0x60] sm:$0xff] }
   0xd   :  { %120 = vst [vmem:[#allocation2 + $0x28] sm:$0xff] %v99_v45  ;;  %v101_v55 = vadd.f32 %v85_v46, %v53_v41  ;;  %v87_v57 = vmul.f32 0.0009999871, %v713_v33  ;;  %v40_v59 = vld [vmem:[%s860_s4 + $0x50] sm:$0xff]  ;;  %512 = vmatpush3.bf16.msra.mxu1 %v511_v43  ;;  %492 = vmatprep.subr.bf16.mxu0 %v594_v3  ;;  %v514_v60 = vpack.c.bf16 %v99_v45, %v98_v44  ;;  %v146_v62 = vld [vmem:[%s858_s2 + $0x68] sm:$0xff]  ;;  %v41_v63 = vld [vmem:[%s860_s4 + $0x58] sm:$0xff] }
   0xe   :  { %121 = vst [vmem:[#allocation2 + $0x30] sm:$0xff] %v733_v49  ;;  %v102_v61 = vadd.f32 %v86_v53, %v54_v52  ;;  %v56_v0 = vmul.f32 0.999, %v40_v59  ;;  %v88_v1 = vmul.f32 0.0009999871, %v728_v47  ;;  %513 = vmatprep.subr.bf16.mxu1 %v594_v3  ;;  %v147_v6 = vld [vmem:[%s858_s2 + $0x70] sm:$0xff] }
   0xf   :  { %122 = vst [vmem:[#allocation2 + $0x38] sm:$0xff] %v101_v55  ;;  %v103_v2 = vadd.f32 %v87_v57, %v55_v56  ;;  %v57_v4 = vmul.f32 0.999, %v41_v63  ;;  %v89_v5 = vmul.f32 0.0009999871, %v738_v50  ;;  %v42_v7 = vld [vmem:[%s860_s4 + $0x60] sm:$0xff]  ;;  %v517_v14 = vpack.c.bf16 %v101_v55, %v733_v49 }
  0x10   :  { %123 = vst [vmem:[#allocation2 + $0x40] sm:$0xff] %v102_v61  ;;  %v104_v9 = vadd.f32 %v88_v1, %v56_v0  ;;  %v148_v10 = vld [vmem:[%s858_s2 + $0x78] sm:$0xff]  ;;  %v43_v11 = vld [vmem:[%s860_s4 + $0x68] sm:$0xff]  ;;  %v58_v12 = vmul.f32 0.999, %v42_v7  ;;  %494 = vmatpush3.bf16.msra.mxu0 %v493_v54  ;;  %v44_v18 = vld [vmem:[%s860_s4 + $0x70] sm:$0xff] }
  0x11   :  { %v90_v13 = vmul.f32 0.0009999871, %v750_v58  ;;  %124 = vst [vmem:[#allocation2 + $0x48] sm:$0xff] %v103_v2  ;;  %v105_v15 = vadd.f32 %v89_v5, %v57_v4  ;;  %v59_v16 = vmul.f32 0.999, %v43_v11  ;;  %v45_v19 = vld [vmem:[%s860_s4 + $0x78] sm:$0xff]  ;;  %515 = vmatpush3.bf16.msra.mxu1 %v514_v60  ;;  %495 = vmatprep.subr.bf16.mxu0 %v594_v3 }
  0x12   :  { %v91_v17 = vmul.f32 0.0009999871, %v146_v62  ;;  %125 = vst [vmem:[#allocation2 + $0x50] sm:$0xff] %v104_v9  ;;  %v60_v21 = vmul.f32 0.999, %v44_v18  ;;  %516 = vmatprep.subr.bf16.mxu1 %v594_v3 }
  0x13   :  { %v106_v20 = vadd.f32 %v90_v13, %v58_v12  ;;  %v61_v22 = vmul.f32 0.999, %v45_v19  ;;  %v92_v23 = vmul.f32 0.0009999871, %v147_v6  ;;  %126 = vst [vmem:[#allocation2 + $0x58] sm:$0xff] %v105_v15 }
  0x14   :  { %v107_v24 = vadd.f32 %v91_v17, %v59_v16  ;;  %v93_v25 = vmul.f32 0.0009999871, %v148_v10 }
  0x15   :  { %127 = vst [vmem:[#allocation2 + $0x60] sm:$0xff] %v106_v20  ;;  %v108_v26 = vadd.f32 %v92_v23, %v60_v21 }
  0x16   :  { %17 = vsyncpa [#allocation5], 0  ;;  %497 = vmatpush3.bf16.msra.mxu0 %v496_v8  ;;  %v499_v27 = vpack.c.bf16 %v738_v50, %v728_v47  ;;  %128 = vst [vmem:[#allocation2 + $0x68] sm:$0xff] %v107_v24  ;;  %v109_v28 = vadd.f32 %v93_v25, %v61_v22  ;;  %518 = vmatpush3.bf16.msra.mxu1 %v517_v14  ;;  %v132_v34 = vld [vmem:[%s856_s0] sm:$0xff]  ;;  %s597_s25 = smov [#allocation2]   ;;  %s598_s27 = smov [#allocation4]  }
  0x17   :  { %498 = vmatprep.subr.bf16.mxu0 %v594_v3  ;;  %v520_v29 = vpack.c.bf16 %v103_v2, %v102_v61  ;;  %129 = vst [vmem:[#allocation2 + $0x70] sm:$0xff] %v108_v26  ;;  %519 = vmatprep.subr.bf16.mxu1 %v594_v3  ;;  %v502_v30 = vpack.c.bf16 %v146_v62, %v750_v58  ;;  %v239_v36 = vld [vmem:[%s857_s1] sm:$0xff]  ;;  %s347_s26 = sshll.u32 %s597_s25, 4  ;;  %s360_s28 = sshll.u32 %s598_s27, 4  ;;  %s348_s26 = int_to_ptr.vmem [resolvable:$true] %s347_s26  ;;  %s821_s28 = int_to_ptr.vmem [resolvable:$true] %s360_s28 }
  0x18   :  { %130 = vst [vmem:[#allocation2 + $0x78] sm:$0xff] %v109_v28  ;;  %v523_v31 = vpack.c.bf16 %v105_v15, %v104_v9  ;;  %v505_v32 = vpack.c.bf16 %v148_v10, %v147_v6  ;;  %v526_v33 = vpack.c.bf16 %v107_v24, %v106_v20  ;;  %v529_v35 = vpack.c.bf16 %v109_v28, %v108_v26  ;;  %v110_v37 = vld [vmem:[%s861_s5] sm:$0x1]  ;;  %s546_s29 = scalar_lea.vmem %s348_s26, 2048  ;;  %p551_p1 = scmp.lt.s32.totalorder %s348_s26, %s348_s26 }
  0x19   :  { %v112_v38 = vld [vmem:[%s859_s3] sm:$0x1]  ;;  %v111_v39 = vmul.f32 0.999, %v110_v37  ;;  %p547_p0 = scmp.ne.s32.totalorder %s348_s26, %s546_s29  ;;  %p552_p2 = scmp.lt.s32.totalorder %s546_s29, %s546_s29 }
  0x1a   :  { %500 = vmatpush3.bf16.msra.mxu0 %v499_v27  ;;  %521 = vmatpush3.bf16.msra.mxu1 %v520_v29  ;;  %v113_v40 = vmul.f32 0.0009999871, %v112_v38  ;;  %v378_v43 = vld [vmem:[%s859_s3] ss:$0 sm:$0xff] }
  0x1b   :  { %501 = vmatprep.subr.bf16.mxu0 %v594_v3  ;;  %522 = vmatprep.subr.bf16.mxu1 %v594_v3  ;;  %p553_p3 = por %p552_p2, %p551_p1 }
  0x1c   :  { %v114_v41 = vadd.f32 %v113_v40, %v111_v39 }
  0x1d   :  { %p554_p4 = pnand %p553_p3, %p547_p0 }
  0x1e   :  { %503 = vmatpush3.bf16.msra.mxu0 %v502_v30  ;;  %524 = vmatpush3.bf16.msra.mxu1 %v523_v31  ;;  %131 = vst [vmem:[#allocation4] sm:$0x1] %v114_v41 }
  0x1f   :  { %504 = vmatprep.subr.bf16.mxu0 %v594_v3  ;;  %525 = vmatprep.subr.bf16.mxu1 %v594_v3 }
  0x22   :  { %506 = vmatpush3.bf16.msra.mxu0 %v505_v32  ;;  %527 = vmatpush3.bf16.msra.mxu1 %v526_v33 }
  0x23   :  { %528 = vmatprep.subr.bf16.mxu1 %v594_v3  ;;  %v241_v3 = vlaneseq }
  0x25   :  { %446 = vmatmul.mubr.f32.vlgmr.msra.gmra.mrb[0].mxu0 %v132_v34  ;;  %v242_v42 = vshrl.u32 %v241_v3, 7 }
  0x26   :  { %530 = vmatpush3.bf16.msra.mxu1 %v529_v35 }
  0x27   :  { %v243_v44 = vsub.s32 0, %v242_v42 }
  0x29   :  { %481 = vmatmul.mubr.f32.vlgmr.msra.gmra.mrb[0].mxu1 %v239_v36  ;;  %v244_v48 = vrot.slane %v114_v41, %v243_v44 }
  0xf8   :  { %v222_v45 = vpop.f32.mrb[0].mxu0 }
  0xf9   :  { %v223_v46 = vadd.f32 %v378_v43, %v222_v45  ;;  %v447_v47 = vpop.f32.mrb[1].mxu0 }
  0xfb   :  { %v226_v49 = vmul.f32 %v223_v46, %v223_v46 }
  0xfc   :  { %v312_v50 = vpop.f32.mrb[0].mxu1 }
  0xfd   :  { %227 = vadd.xlane.f32.xlu0 %v226_v49  ;;  %v313_v51 = vadd.f32 %v312_v50, %v244_v48  ;;  %v482_v52 = vpop.f32.mrb[1].mxu1 }
  0xff   :  { %v316_v53 = vmul.f32 %v313_v51, %v313_v51 }
 0x101   :  { %317 = vadd.xlane.f32.xlu0 %v316_v53 }
 0x18a   :  { %v228_v54 = vpop.xlane.xlu0 %227 }
 0x18b   :  { %538 = vrsqrt.f32 %v228_v54  ;;  %vm231_vm1 = vcmp.eq.f32.partialorder %v228_v54, inf  ;;  %v234_v58 = vand.u32 2147483648, %v228_v54  ;;  %vm233_vm2 = vcmp.eq.f32.partialorder %v228_v54, 0.0 }
 0x18e   :  { %v318_v55 = vpop.xlane.xlu0 %317 }
 0x18f   :  { %540 = vrsqrt.f32 %v318_v55  ;;  %vm321_vm3 = vcmp.eq.f32.partialorder %v318_v55, inf  ;;  %v324_v0 = vand.u32 2147483648, %v318_v55  ;;  %vm323_vm4 = vcmp.eq.f32.partialorder %v318_v55, 0.0 }
 0x195   :  { %v539_v56 = vpop.eup %538 }
 0x196   :  { %v230_v57 = vmul.f32 %v539_v56, %v228_v54 }
 0x198   :  { %v232_v59 = vsel %vm231_vm1, %v228_v54, %v230_v57 }
 0x199   :  { %v235_v60 = vsel %vm233_vm2, %v234_v58, %v232_v59  ;;  %v541_v61 = vpop.eup %540 }
 0x19a   :  { %v236_v62 = vmax.f32 %v235_v60, 1e-12  ;;  %v320_v63 = vmul.f32 %v541_v61, %v318_v55 }
 0x19c   :  { %542 = vrcp.f32 %v236_v62  ;;  %v322_v1 = vsel %vm321_vm3, %v318_v55, %v320_v63 }
 0x19d   :  { %v325_v2 = vsel %vm323_vm4, %v324_v0, %v322_v1 }
 0x19e   :  { %v326_v4 = vmax.f32 %v325_v2, 1e-12 }
 0x1a0   :  { %544 = vrcp.f32 %v326_v4 }
 0x1a6   :  { %v543_v5 = vpop.eup %542 }
 0x1a7   :  { %v238_v6 = vmul.f32 %v543_v5, %v223_v46 }
 0x1a9   :  { %v330_v7 = vmul.f32 14.285714, %v238_v6 }
 0x1aa   :  { %v545_v8 = vpop.eup %544 }
 0x1ab   :  { %331 = vst [vmem:[%s862_s6] sm:$0xff] %v330_v7  ;;  %v328_v9 = vmul.f32 %v545_v8, %v313_v51 }
 0x1ad   :  { %v332_v10 = vmul.f32 %v330_v7, %v328_v9  ;;  %329 = vst [vmem:[%s863_s7] sm:$0xff] %v328_v9 }
 0x1af   :  { %333 = vadd.xlane.f32.xlu1 %v332_v10 }
 0x1b0   :  { %557 = shalt.err (!%p554_p4)
}
 0x1b1   :  { %s558_s11 = scalar_lea.hbm %s865_s9, 2048 }
 0x1b2   :  { %p559_p5 = scmp.ne.s32.totalorder %s865_s9, %s558_s11  ;;  %p562_p6 = scmp.lt.u32.totalorder %s558_s11, %s865_s9 }
 0x1b4   :  { %p564_p7 = pnand %p562_p6, %p559_p5 }
 0x1b6   :  { %567 = shalt.err (!%p564_p7)
}
 0x1b7   :  { %s599_s15 = smov 128   ;;  %s600_s2 = smov 8  }
 0x1b8   :  { %353 = dma.vmem_to_hbm [thread:$0]  %s348_s26, 2048, %s865_s9, [#allocation3], %s599_s15, %s599_s15, %s600_s2  }
 0x1b9   :  { %s568_s17 = scalar_lea.vmem %s821_s28, 16  ;;  %s572_s18 = scalar_lea.vmem %s821_s28, 32 }
 0x1ba   :  { %p569_p8 = scmp.ne.s32.totalorder %s821_s28, %s568_s17  ;;  %p573_p9 = scmp.lt.s32.totalorder %s821_s28, %s821_s28 }
 0x1bb   :  { %p574_p10 = scmp.lt.s32.totalorder %s572_s18, %s568_s17 }
 0x1bd   :  { %p575_p11 = por %p574_p10, %p573_p9 }
 0x1bf   :  { %p576_p12 = pnand %p575_p11, %p569_p8 }
 0x1c1   :  { %579 = shalt.err (!%p576_p12)
}
 0x1c2   :  { %s580_s21 = scalar_lea.hbm %s866_s10, 16 }
 0x1c3   :  { %p581_p13 = scmp.ne.s32.totalorder %s866_s10, %s580_s21  ;;  %p584_p0 = scmp.lt.u32.totalorder %s580_s21, %s866_s10 }
 0x1c5   :  { %p586_p1 = pnand %p584_p0, %p581_p13 }
 0x1c7   :  { %589 = shalt.err (!%p586_p1)
}
 0x1c8   :  { %363 = dma.vmem_to_hbm [thread:$0]  %s821_s28, 16, %s866_s10, [#allocation5]  }
 0x23c   :  { %v334_v11 = vpop.xlane.xlu1 %333 }
 0x23d   :  { %335 = vst [vmem:[%s864_s8] sm:$0xff] %v334_v11 }
 0x23e   :  { %590 = dma.done.wait [#allocation3], 2048  }
 0x23f   :  { %591 = vsyncadd [#allocation3], 4294965248 }
 0x240   :  { %592 = dma.done.wait [#allocation5], 16  }
 0x241   :  { %593 = vsyncadd [#allocation5], 4294967280 }
 0x242   :  { %376 = vsyncpa [#allocation3], 1 }
 0x243   :  { %377 = vsyncpa [#allocation5], 1 }

</bundles_post_ra>
